<compile_context>
chip_gen: v5e
topology: v5e:2x2
jax: 0.10.0
libtpu: 0.0.40
codegen_flags: <defaults>
</compile_context>

<pallas_src>
import jax
import jax.numpy as jnp
from jax import lax
from jax.experimental import pallas as pl
from jax.experimental.pallas import tpu as pltpu

M_MARGIN = 0.25
GAMMA = 256.0
DEFAULT_ROW_TILE = 512          # upper cap; actual TN is VMEM-budget / C aware
_OUT_LANES = 8 * 128            # one lane-dense (8,128) slab per tile


def _round_up(x, m):
    return (x + m - 1) // m * m


def _default_vmem_budget_bytes():
    """~60% of physical VMEM for the working set (double-buffered logits + temporaries)."""
    try:
        cap = pltpu.get_tpu_info().vmem_capacity_bytes
    except Exception:
        cap = 64 * 1024 * 1024   # assume v7x-sized VMEM if the query is unavailable
    return int(cap * 0.6)


def circle_loss_kernel(n_ref, logits_ref, packed_ref, out_ref):
    """One row tile. packed_ref carries (label*2 + is_pos); n_ref holds the global row count."""
    x = logits_ref[...].astype(jnp.float32)            # widen bf16 -> f32 in-kernel
    tn, c = x.shape

    packed = packed_ref[...]                            # (TN, 1) int32
    labels_col = packed >> 1                             # class index (CE target)
    is_pos = (packed & 1) > 0                            # row index appears in labels

    # Per-row constants (TN,1), then ~6 VALU ops per (TN,C) element:
    #   positive rows:  relu(1 + m - x) * gamma * (x - (1 - m))
    #   negative rows:  relu(x + m)     * gamma * (x - m)
    a = jnp.where(is_pos, 1.0 + M_MARGIN, M_MARGIN)
    s = jnp.where(is_pos, -1.0, 1.0)
    gd = GAMMA * jnp.where(is_pos, 1.0 - M_MARGIN, M_MARGIN)
    scaled = jnp.maximum(a + s * x, 0.0) * (GAMMA * x - gd)        # (TN, C) f32

    # CrossEntropy pieces (max-subtracted logsumexp), per row.
    mx = jnp.max(scaled, axis=1, keepdims=True)
    lse = mx + jnp.log(jnp.sum(jnp.exp(scaled - mx), axis=1, keepdims=True))
    col_iota = lax.broadcasted_iota(jnp.int32, (tn, c), 1)
    picked = jnp.sum(jnp.where(col_iota == labels_col, scaled, 0.0),
                     axis=1, keepdims=True)

    # Ragged last tile: rows >= N hold garbage; select (don't multiply) so Inf/NaN can't leak.
    row_idx = pl.program_id(0) * tn + lax.broadcasted_iota(jnp.int32, (tn, 1), 0)
    per_row = jnp.where(row_idx < n_ref[0], lse - picked, 0.0)

    tile_sum = jnp.sum(per_row)
    # Broadcast the scalar over the full (8,128) block -> unmasked, lane-dense store.
    out_ref[...] = jnp.full(out_ref.shape, tile_sum, dtype=jnp.float32)

    # TODO(synk): for very large C (>= ~8-16K classes) add an inner C tile with an online
    # (flash-style) running max/sum for the logsumexp and the picked accumulator.


def circle_loss(logits, labels, *, row_tile=DEFAULT_ROW_TILE, vmem_budget_bytes=None):
    """logits: [N, C] (f32 or bf16, streamed in its own dtype); labels: [N] ints (< min(N, C))."""
    n, c = logits.shape
    labels_i32 = labels.astype(jnp.int32)

    # O(N) membership scatter: row r is "positive" iff r appears in labels
    # (matches PyTorch's alpha[labels] / delta[labels] row-indexing semantics).
    # NOTE: like the PyTorch module, every label must be < N and < C.
    row_mask = jnp.zeros((n,), jnp.int32).at[labels_i32].set(1)
    # Single packed (N,1) int32 side input: bit 0 = membership, bits 1.. = label.
    packed_col = (labels_i32 * 2 + row_mask).reshape(n, 1)

    # VMEM-budget / C-aware row tile: double-buffered logits + ~4 live (TN,C) f32 temps.
    if vmem_budget_bytes is None:
        vmem_budget_bytes = _default_vmem_budget_bytes()
    in_itemsize = jnp.dtype(logits.dtype).itemsize
    bytes_per_row = c * (2 * in_itemsize + 4 * 4)
    tn = max(8, min(row_tile, vmem_budget_bytes // bytes_per_row // 8 * 8))
    # v7x has 2 TensorCores and the grid axis is "parallel": keep >= 2 tiles when N allows.
    tn = max(8, min(tn, _round_up(pl.cdiv(n, 2), 8)))
    num_tiles = pl.cdiv(n, tn)   # ragged last tile is masked in-kernel; no jnp.pad copy

    n_scalar = jnp.array([n], jnp.int32)

    partials = pl.pallas_call(
        circle_loss_kernel,
        out_shape=jax.ShapeDtypeStruct((num_tiles, 8, 128), jnp.float32),
        grid_spec=pltpu.PrefetchScalarGridSpec(
            num_scalar_prefetch=1,                          # n lands in SMEM
            grid=(num_tiles,),
            in_specs=[
                pl.BlockSpec((tn, c), lambda i, n_ref: (i, 0)),   # logits row tile (orig dtype)
                pl.BlockSpec((tn, 1), lambda i, n_ref: (i, 0)),   # packed label/membership
            ],
            out_specs=pl.BlockSpec((1, 8, 128), lambda i, n_ref: (i, 0, 0)),
        ),
        compiler_params=pltpu.CompilerParams(
            dimension_semantics=("parallel",),               # row tiles are independent
            vmem_limit_bytes=min(vmem_budget_bytes + (8 << 20), 100 << 20),
        ),
    )(n_scalar, logits, packed_col)

    # Each tile wrote its partial sum to all 8*128 lanes; dense sum avoids a strided gather.
    return jnp.sum(partials) / (jnp.float32(_OUT_LANES) * jnp.float32(n))


def circle_loss_ref(logits, labels):
    # Pure-JAX reference reproducing the literal PyTorch forward.
    m, gamma = M_MARGIN, GAMMA
    n = logits.shape[0]
    x = logits.astype(jnp.float32)
    alpha = jnp.maximum(x + m, 0.0)
    alpha = alpha.at[labels].set(jnp.maximum(-x[labels] + 1.0 + m, 0.0))
    delta = jnp.full_like(x, m).at[labels].set(1.0 - m)
    s = alpha * (x - delta) * gamma
    lse = jax.nn.logsumexp(s, axis=1)
    picked = s[jnp.arange(n), labels]
    return jnp.mean(lse - picked)


if __name__ == "__main__":
    key = jax.random.PRNGKey(0)
    k1, k2 = jax.random.split(key)
    # N deliberately not a multiple of the row tile -> exercises the ragged-tile masking path.
    N, C = 12, 16
    logits = jax.random.normal(k1, (N, C), dtype=jnp.float32)
    # Label values must be valid both as row indices (< N) and class indices (< C),
    # matching the PyTorch module's indexing semantics.
    labels = jax.random.randint(k2, (N,), 0, min(N, C), dtype=jnp.int32)

    loss = circle_loss(logits, labels)
    jax.block_until_ready(loss)

    ref = circle_loss_ref(logits, labels)
    assert jnp.allclose(loss, ref, rtol=1e-2, atol=1e-2), (loss, ref)
    print("KERNEL_OK")
</pallas_src>

<mosaic_0001>
module attributes {stable_mosaic.version = 11 : i64} {
  func.func @circle_loss_kernel(%arg0: i32, %arg1: memref<1xi32, #tpu.memory_space<smem>>, %arg2: memref<8x16xf32, #tpu.memory_space<vmem>>, %arg3: memref<8x1xi32, #tpu.memory_space<vmem>>, %arg4: memref<1x8x128xf32, #tpu.memory_space<vmem>>) attributes {dimension_semantics = [#tpu.dimension_semantics<parallel>], iteration_bounds = array<i64: 2>, scalar_prefetch = 1 : i64, scratch_operands = 0 : i64, tpu.core_type = #tpu.core_type<tc>, window_params = [{transform_indices = @transform_0, window_bounds = array<i64: 8, 16>}, {transform_indices = @transform_1, window_bounds = array<i64: 8, 1>}, {transform_indices = @transform_2, window_bounds = array<i64: 1, 8, 128>}]} {
    %c0 = arith.constant 0 : index
    %c0_0 = arith.constant 0 : index
    %0 = vector.load %arg2[%c0, %c0_0] : memref<8x16xf32, #tpu.memory_space<vmem>>, vector<8x16xf32>
    %c0_1 = arith.constant 0 : index
    %c0_2 = arith.constant 0 : index
    %1 = vector.load %arg3[%c0_1, %c0_2] : memref<8x1xi32, #tpu.memory_space<vmem>>, vector<8x1xi32>
    %c1_i32 = arith.constant 1 : i32
    %2 = vector.broadcast %c1_i32 : i32 to vector<8x1xi32>
    %3 = arith.shrsi %1, %2 : vector<8x1xi32>
    %c1_i32_3 = arith.constant 1 : i32
    %4 = vector.broadcast %c1_i32_3 : i32 to vector<8x1xi32>
    %5 = arith.andi %1, %4 : vector<8x1xi32>
    %c0_i32 = arith.constant 0 : i32
    %6 = vector.broadcast %c0_i32 : i32 to vector<8x1xi32>
    %7 = arith.cmpi sgt, %5, %6 : vector<8x1xi32>
    %cst = arith.constant 1.250000e+00 : f32
    %cst_4 = arith.constant 2.500000e-01 : f32
    %8 = vector.broadcast %cst : f32 to vector<8x1xf32>
    %9 = vector.broadcast %cst_4 : f32 to vector<8x1xf32>
    %10 = arith.select %7, %8, %9 : vector<8x1xi1>, vector<8x1xf32>
    %cst_5 = arith.constant -1.000000e+00 : f32
    %cst_6 = arith.constant 1.000000e+00 : f32
    %11 = vector.broadcast %cst_5 : f32 to vector<8x1xf32>
    %12 = vector.broadcast %cst_6 : f32 to vector<8x1xf32>
    %13 = arith.select %7, %11, %12 : vector<8x1xi1>, vector<8x1xf32>
    %cst_7 = arith.constant 7.500000e-01 : f32
    %cst_8 = arith.constant 2.500000e-01 : f32
    %14 = vector.broadcast %cst_7 : f32 to vector<8x1xf32>
    %15 = vector.broadcast %cst_8 : f32 to vector<8x1xf32>
    %16 = arith.select %7, %14, %15 : vector<8x1xi1>, vector<8x1xf32>
    %cst_9 = arith.constant 2.560000e+02 : f32
    %17 = vector.broadcast %cst_9 : f32 to vector<8x1xf32>
    %18 = arith.mulf %17, %16 : vector<8x1xf32>
    %19 = vector.broadcast %13 : vector<8x1xf32> to vector<8x16xf32>
    %20 = arith.mulf %19, %0 : vector<8x16xf32>
    %21 = vector.broadcast %10 : vector<8x1xf32> to vector<8x16xf32>
    %22 = arith.addf %21, %20 : vector<8x16xf32>
    %cst_10 = arith.constant 0.000000e+00 : f32
    %23 = vector.broadcast %cst_10 : f32 to vector<8x16xf32>
    %24 = arith.maximumf %22, %23 : vector<8x16xf32>
    %cst_11 = arith.constant 2.560000e+02 : f32
    %25 = vector.broadcast %cst_11 : f32 to vector<8x16xf32>
    %26 = arith.mulf %25, %0 : vector<8x16xf32>
    %27 = vector.broadcast %18 : vector<8x1xf32> to vector<8x16xf32>
    %28 = arith.subf %26, %27 : vector<8x16xf32>
    %29 = arith.mulf %24, %28 : vector<8x16xf32>
    %cst_12 = arith.constant dense<0xFF800000> : vector<8xf32>
    %30 = vector.multi_reduction <maximumf>, %29, %cst_12 [1] : vector<8x16xf32> to vector<8xf32>
    %31 = vector.shape_cast %30 : vector<8xf32> to vector<8x1xf32>
    %32 = vector.broadcast %31 : vector<8x1xf32> to vector<8x16xf32>
    %33 = arith.subf %29, %32 : vector<8x16xf32>
    %34 = math.exp %33 : vector<8x16xf32>
    %cst_13 = arith.constant dense<0.000000e+00> : vector<8xf32>
    %35 = vector.multi_reduction <add>, %34, %cst_13 [1] : vector<8x16xf32> to vector<8xf32>
    %36 = vector.shape_cast %35 : vector<8xf32> to vector<8x1xf32>
    %37 = math.log %36 : vector<8x1xf32>
    %38 = arith.addf %31, %37 : vector<8x1xf32>
    %39 = tpu.iota {dimensions = array<i32: 1>} : vector<8x16xi32>
    %40 = vector.broadcast %3 : vector<8x1xi32> to vector<8x16xi32>
    %41 = arith.cmpi eq, %39, %40 : vector<8x16xi32>
    %cst_14 = arith.constant 0.000000e+00 : f32
    %42 = vector.broadcast %cst_14 : f32 to vector<8x16xf32>
    %43 = arith.select %41, %29, %42 : vector<8x16xi1>, vector<8x16xf32>
    %cst_15 = arith.constant dense<0.000000e+00> : vector<8xf32>
    %44 = vector.multi_reduction <add>, %43, %cst_15 [1] : vector<8x16xf32> to vector<8xf32>
    %45 = vector.shape_cast %44 : vector<8xf32> to vector<8x1xf32>
    %c8_i32 = arith.constant 8 : i32
    %46 = arith.muli %arg0, %c8_i32 : i32
    %47 = tpu.iota {dimensions = array<i32: 0>} : vector<8x1xi32>
    %48 = vector.broadcast %46 : i32 to vector<8x1xi32>
    %49 = arith.addi %48, %47 : vector<8x1xi32>
    %c0_16 = arith.constant 0 : index
    %50 = memref.load %arg1[%c0_16] : memref<1xi32, #tpu.memory_space<smem>>
    %51 = vector.broadcast %50 : i32 to vector<8x1xi32>
    %52 = arith.cmpi slt, %49, %51 : vector<8x1xi32>
    %53 = arith.subf %38, %45 : vector<8x1xf32>
    %cst_17 = arith.constant 0.000000e+00 : f32
    %54 = vector.broadcast %cst_17 : f32 to vector<8x1xf32>
    %55 = arith.select %52, %53, %54 : vector<8x1xi1>, vector<8x1xf32>
    %56 = vector.shape_cast %55 : vector<8x1xf32> to vector<1x8x1xf32>
    %cst_18 = arith.constant dense<0.000000e+00> : vector<1xf32>
    %57 = vector.multi_reduction <add>, %56, %cst_18 [1, 2] : vector<1x8x1xf32> to vector<1xf32>
    %58 = vector.shape_cast %57 : vector<1xf32> to vector<1x1x1xf32>
    %59 = vector.extract %58[0, 0, 0] : f32 from vector<1x1x1xf32>
    %60 = vector.broadcast %59 : f32 to vector<1x8x128xf32>
    %c0_19 = arith.constant 0 : index
    %c0_20 = arith.constant 0 : index
    %c0_21 = arith.constant 0 : index
    %61 = vector.load %arg4[%c0_19, %c0_20, %c0_21] : memref<1x8x128xf32, #tpu.memory_space<vmem>>, vector<1x8x128xf32>
    tpu.vector_store %arg4[%c0_19, %c0_20, %c0_21], %60 {strides = array<i32>} : memref<1x8x128xf32, #tpu.memory_space<vmem>>, vector<1x8x128xf32>,
    return
  }
  func.func @transform_0(%arg0: i32, %arg1: memref<1xi32, #tpu.memory_space<smem>>) -> (i32, i32) {
    %c0_i32 = arith.constant 0 : i32
    %c0_i32_0 = arith.constant 0 : i32
    return %arg0, %c0_i32 : i32, i32
  }
  func.func @transform_1(%arg0: i32, %arg1: memref<1xi32, #tpu.memory_space<smem>>) -> (i32, i32) {
    %c0_i32 = arith.constant 0 : i32
    %c0_i32_0 = arith.constant 0 : i32
    return %arg0, %c0_i32 : i32, i32
  }
  func.func @transform_2(%arg0: i32, %arg1: memref<1xi32, #tpu.memory_space<smem>>) -> (i32, i32, i32) {
    %c0_i32 = arith.constant 0 : i32
    %c0_i32_0 = arith.constant 0 : i32
    %c0_i32_1 = arith.constant 0 : i32
    return %arg0, %c0_i32, %c0_i32_0 : i32, i32, i32
  }
}

</mosaic_0001>

<bundles_post_ra>
// kernel: tpu_custom_call.1
= control target key start
LH: loop header
LB: loop body
LE: loop exit
PB: predicated region body
PF: predicated region fallthrough
CT: control target
= control target key end

     0   :  { %s569_s0 = inlined_call_operand.<no memory space> [shape: s32[1], index: 0, kind: input, shape index: {}]   ;;  %s570_s1 = inlined_call_operand.vmem [shape: f32[12,16], index: 1, kind: input, shape index: {}]   ;;  %s571_s2 = inlined_call_operand.vmem [shape: s32[12,1], index: 2, kind: input, shape index: {}]   ;;  %s572_s3 = inlined_call_operand.hbm [shape: f32[2,8,128], index: 3, kind: output, shape index: {}]  }
   0x1   :  { %8 = sst [smem:[#allocation3]] %s569_s0 }
   0x2   :  { %9 = vsyncpa [#allocation5], 0 }
   0x3   :  { %11 = vsyncpa [#allocation5 + $0x1], 0  ;;  %s478_s14 = smov 0   ;;  %s480_s15 = smov 0  }
   0x4   :  { %s482_s16 = smov 0   ;;  %s484_s17 = smov 0  }
   0x5 LB: > { %s499_s0 = sadd.s32 4294967295, %s450_s17   ;;  %s321_s18 = sadd.s32 4294967294, %s450_s17   ;;  %s450_s17 = sphi %s484_s17, %s578_s17   ;;  %s446_s16 = sphi %s482_s16, %s577_s16   ;;  %s442_s15 = sphi %s480_s15, %s576_s15   ;;  %s438_s14 = sphi %s478_s14, %s575_s14  }
   0x6   : > { %s503_s19 = sadd.s32 1, %s450_s17   ;;  %s76_s20 = sadd.s32 1, %s446_s16 }
   0x7   : > { %s73_s21 = ssub.s32 %s450_s17, %s503_s19  ;;  %p86_p0 = scmp.ne.s32.totalorder %s446_s16, %s442_s15 }
   0x8   : > { %p74_p1 = scmp.eq.s32.totalorder %s73_s21, 0  ;;  %p87_p2 = scmp.eq.s32.totalorder %s499_s0, 1 }
   0x9   : > { %p92_p3 = scmp.ne.s32.totalorder %s442_s15, %s438_s14  ;;  %p93_p4 = scmp.eq.s32.totalorder %s321_s18, 1 }
   0xa   : > { %s514_s22 = scalar_select %p74_p1, %s446_s16, %s76_s20  }
   0xb   : > { %p516_p5 = por %p87_p2, %p86_p0  ;;  %p520_p6 = por %p93_p4, %p92_p3 }
   0xc   : > { %p324_p7 = scmp.ge.s32.totalorder %s450_s17, 1  ;;  %p125_p8 = scmp.lt.s32.totalorder %s450_s17, 3 }
   0xe   : > { %p126_p9 = pnand %p324_p7, %p125_p8 }
   0xf   : > { %p150_p10 = scmp.lt.s32.totalorder (!%p126_p9), %s499_s0, 1  ;;  %s216_s6 = sld [smem:[#allocation3]] (!%p126_p9) }
  0x10   : > { %129 = sbr.rel (%p126_p9) target bundleno = 605 (0x25d), region = 28  ;;  %s328_s7 = sshll.u32 (!%p126_p9), %s499_s0, 3 }
  0x11   : > { %s147_s8 = sand.u32 (!%p126_p9), 1, %s442_s15   ;;  %s245_s12 = scalar_lea.hbm (!%p126_p9), %s572_s3, %s328_s7 }
  0x12   : > { %s325_s9 = sshll.u32 (!%p126_p9), %s147_s8, 3  ;;  %s249_s18 = sshll.u32 (!%p126_p9), %s245_s12, 4  ;;  %s250_s18 = int_to_ptr.hbm [resolvable:$true] %s249_s18 }
  0x13   : > { %s149_s13 = scalar_lea.vmem (!%p126_p9), [#allocation4], %s325_s9  ;;  %s235_s21 = scalar_lea.sflag (!%p126_p9), [#allocation5], %s147_s8 }
  0x15   : > { %v452_v0 = vmov 0   ;;  %s151_s25 = scalar_select %p150_p10, %s499_s0, 1  ;;  %v453_v3 = vmov 0.25   ;;  %v454_v5 = vmov 1.0   ;;  %vm188_vm1 = vcmask 130048  }
  0x16   : > { %377 = vset.pattern.permute.xlu0 %v452_v0  ;;  %383 = vset.pattern.permute.xlu1 %v452_v0  ;;  %v201_v28 = vlaneseq  ;;  %v214_v36 = vstv %s328_s7  ;;  %v217_v39 = vstv %s216_s6  ;;  %vm221_vm4 = vcmask 7168   ;;  %s247_s0 = sshll.u32 %s149_s13, 4  ;;  %s248_s0 = int_to_ptr.vmem [resolvable:$true] %s247_s0 }
  0x17   : > { %s326_s26 = sshll.u32 %s151_s25, 3  ;;  %s402_s25 = sshra.s32 %s250_s18, 4  ;;  %s403_s25 = int_to_ptr.hbm [resolvable:$true] %s402_s25 }
  0x18   : > { %s157_s29 = scalar_lea.vmem %s571_s2, %s326_s26  ;;  %s153_s5 = scalar_lea.vmem %s570_s1, %s326_s26  ;;  %v202_v29 = vand.u32 127, %v201_v28  ;;  %v213_v35 = vshrl.u32 %v201_v28, 7 }
  0x19   : > { %v159_v1 = vld [vmem:[%s157_s29] sm:$0xff]  ;;  %s404_s26 = scalar_lea.hbm %s403_s25, 8  ;;  %s408_s29 = scalar_lea.hbm %s572_s3, 16 }
  0x1a   : > { %v161_v2 = vand.u32 1, %v159_v1  ;;  %v158_v11 = vld [vmem:[%s153_s5] sm:$0xff]  ;;  %v160_v22 = vshra.s32 %v159_v1, 1  ;;  %v215_v38 = vadd.s32 %v214_v36, %v213_v35  ;;  %p405_p11 = scmp.ne.s32.totalorder %s403_s25, %s404_s26  ;;  %p409_p0 = scmp.lt.s32.totalorder %s403_s25, %s572_s3 }
  0x1b   : > { %v180_v16 = vmul.f32 256.0, %v158_v11  ;;  %p410_p1 = scmp.lt.s32.totalorder %s408_s29, %s404_s26 }
  0x1c   : > { %vm162_vm0 = vcmp.gt.s32.totalorder %v161_v2, 0  ;;  %vm218_vm3 = vcmp.lt.s32.totalorder %v215_v38, %v217_v39  ;;  %p406_p12 = pnand %p405_p11, %p516_p5 }
  0x1d   : > { %v163_v4 = vsel %vm162_vm0, 1.25, %v453_v3  ;;  %v164_v6 = vsel %vm162_vm0, -1.0, %v454_v5  ;;  %v165_v8 = vsel %vm162_vm0, 0.75, %v453_v3  ;;  %p411_p2 = por %p410_p1, %p409_p0 }
  0x1e   : > { %v378_v7 = vpack.i.bf16 %v163_v4, %v164_v6  ;;  %v166_v9 = vmul.f32 256.0, %v165_v8  ;;  %p407_p13 = pneg %p406_p12 }
  0x20   : > { %379 = vperm.xlu0 %377, %v378_v7   ;;  %p412_p3 = pnand %p411_p2, %p407_p13 }
  0x28   : > { %183 = vperm.xlu0 %377, %v166_v9  }
  0x92   : > { %v380_v10 = vpop.permute.xlu0 %379 }
  0x93   : > { %v381_v12 = vunpack.i.l.bf16 %v380_v10  ;;  %v382_v13 = vunpack.i.h.bf16 %v380_v10 }
  0x95   : > { %v172_v14 = vmul.f32 %v381_v12, %v158_v11 }
  0x97   : > { %v178_v15 = vadd.f32 %v382_v13, %v172_v14 }
  0x99   : > { %v179_v18 = vmax.f32 %v178_v15, 0.0 }
  0x9a   : > { %v184_v17 = vpop.permute.xlu0 %183 }
  0x9b   : > { %v186_v19 = vsub.f32 %v180_v16, %v184_v17 }
  0x9d   : > { %v187_v20 = vmul.f32 %v186_v19, %v179_v18 }
  0x9f   : > { %v189_v21 = vsel %vm188_vm1, %v187_v20, -inf }
  0xa0   : > { %190 = vmax.xlane.f32.xlu1 %v189_v21 }
  0xb9   : > { %204 = vperm.xlu1 %383, %v160_v22  }
 0x113   : > { %v191_v23 = vpop.xlane.xlu1 %190 }
 0x114   : > { %v192_v24 = vsub.f32 %v187_v20, %v191_v23 }
 0x116   : > { %v193_v25 = vmul.f32 1.442695, %v192_v24 }
 0x118   : > { %384 = vpow2.f32 %v193_v25 }
 0x11e   : > { %v385_v26 = vpop.eup %384 }
 0x11f   : > { %v195_v27 = vsel %vm188_vm1, %v385_v26, 0.0 }
 0x120   : > { %196 = vadd.xlane.f32.xlu2 %v195_v27 }
 0x12b   : > { %v205_v30 = vpop.permute.xlu1 %204 }
 0x12c   : > { %vm206_vm2 = vcmp.eq.s32.totalorder %v202_v29, %v205_v30 }
 0x12d   : > { %v207_v31 = vsel %vm206_vm2, %v187_v20, 0.0 }
 0x12e   : > { %v208_v32 = vsel %vm188_vm1, %v207_v31, 0.0 }
 0x12f   : > { %209 = vadd.xlane.f32.xlu2 %v208_v32 }
 0x193   : > { %v197_v33 = vpop.xlane.xlu2 %196 }
 0x194   : > { %386 = vlog2.f32 %v197_v33 }
 0x19a   : > { %v387_v34 = vpop.eup %386 }
 0x19b   : > { %v199_v37 = vmul.f32 0.6931472, %v387_v34 }
 0x19d   : > { %v200_v40 = vadd.f32 %v199_v37, %v191_v23 }
 0x1a2   : > { %v210_v41 = vpop.xlane.xlu2 %209 }
 0x1a3   : > { %v219_v42 = vsub.f32 %v200_v40, %v210_v41 }
 0x1a5   : > { %v220_v43 = vsel %vm218_vm3, %v219_v42, 0.0 }
 0x1a6   : > { %v222_v44 = vsel %vm221_vm4, %v220_v43, 0.0 }
 0x1a7   : > { %223 = vadd.xlane.f32.xlu0 %v222_v44 }
 0x21a   : > { %v224_v45 = vpop.xlane.xlu0 %223 }
 0x21b   : > { %v225_v46 = vrot.slane %v224_v45, 4 }
 0x21d   : > { %v226_v47 = vadd.f32 %v225_v46, %v224_v45 }
 0x21f   : > { %v227_v48 = vrot.slane %v226_v47, 2 }
 0x221   : > { %v228_v49 = vadd.f32 %v227_v48, %v226_v47 }
 0x223   : > { %v229_v50 = vrot.slane %v228_v49, 1 }
 0x225   : > { %v230_v51 = vadd.f32 %v229_v50, %v228_v49 }
 0x227   : > { %333 = vpush %v230_v51 }
 0x258   : > { %s334_s20 = spop %333 }
 0x259   : > { %v232_v52 = vstv %s334_s20 }
 0x25a   : > { %233 = vst [vmem:[%s149_s13] sm:$0xff] %v232_v52 }
 0x25b   : > { %415 = shalt.err (!%p412_p3)
}
 0x25c   : > { %335 = dma.vmem_to_hbm [thread:$0]  (%p516_p5), %s248_s0, 128, %s250_s18, %s235_s21  }
 0x25d PF: > { %p341_p4 = scmp.ge.s32.totalorder %s450_s17, 2  ;;  %s261_s5 = sand.u32 1, %s438_s14  }
 0x25e   : > { %s262_s6 = scalar_lea.sflag [#allocation5], %s261_s5 }
 0x25f   : > { %p338_p7 = pnand %p341_p4, %p520_p6 }
 0x261   : > { %p339_p8 = pneg %p338_p7 }
 0x263   : > { %433 = dma.done.wait (%p339_p8), %s262_s6, 128  }
 0x264   : > { %435 = vsyncadd (%p339_p8), %s262_s6, 4294967168  ;;  %p14_p9 = scmp.ge.s32.totalorder %s503_s19, 4   ;;  %s575_s14 = smov %s442_s15 }
 0x265   : > { %s576_s15 = smov %s446_s16  ;;  %s577_s16 = smov %s514_s22 }
 0x266   : > { %s578_s17 = smov %s503_s19  ;;  %16 = sbr.rel (!%p14_p9) target bundleno = 5 (0x5), region = 66 }
 0x26b   :  { %268 = vsyncpa [#allocation5], 1 }
 0x26c   :  { %270 = vsyncpa [#allocation5 + $0x1], 1 }

</bundles_post_ra>
